<compile_context>
chip_gen: v5e
topology: v5e:2x2
jax: 0.10.0
libtpu: 0.0.40
codegen_flags: <defaults>
</compile_context>

<pallas_src>
import functools

import jax
import jax.numpy as jnp
from jax.experimental import pallas as pl
from jax.experimental.pallas import tpu as pltpu

LEAKY_SLOPE = 0.01
BN_EPS = 1e-5
LANE = 128


def _round_up(n, m):
    return ((n + m - 1) // m) * m


# --------------------------------- Pallas kernel -----------------------------------
def _gate_generate_kernel(comb_ref, mprev_ref, mnext_ref, w3_ref, b3_ref,
                          wo_ref, bo_ref, o_ref, *, hidden_dim, t_valid):
    """Whole GateGenerate forward for one batch element, fused into one kernel.

    Layout: channels on sublanes, zero-padded time on lanes (lane-dense stores).
    """
    comb = comb_ref[0]                               # (2S, Tp) f32 == cat([x, h], ch)
    m_prev = mprev_ref[...]                          # (Tp, Tp) bf16: v @ m_prev -> v[t-1]
    m_next = mnext_ref[...]                          # (Tp, Tp) bf16: v @ m_next -> v[t+1]

    def conv3(v, w_ref, b_ref):
        # Conv1d(k=3, padding=1) == W_packed @ [v(t-1); v(t); v(t+1)].
        # The +/-1 lane shifts are exact 0/1 shift-matrix matmuls with zero fill at
        # the borders (== Conv1d zero padding); single bf16 MXU pass each.
        v_bf = v.astype(jnp.bfloat16)
        prev = jnp.dot(v_bf, m_prev, preferred_element_type=jnp.float32)
        nxt = jnp.dot(v_bf, m_next, preferred_element_type=jnp.float32)
        taps = jnp.concatenate(
            [prev.astype(jnp.bfloat16), v_bf, nxt.astype(jnp.bfloat16)],
            axis=0)                                  # (3*C, Tp) bf16
        return jnp.dot(w_ref[...], taps, preferred_element_type=jnp.float32) + b_ref[...]

    # -- fused conv_gates / h_cur_conv(+BN) / conv_can: one lane-dense matmul --------
    y3 = conv3(comb, w3_ref, b3_ref)                 # (3H, Tp) f32
    gates = y3[:hidden_dim]                          # conv_gates(combined)
    hcur = y3[hidden_dim:2 * hidden_dim]             # h_cur_conv conv + folded BN
    cand = y3[2 * hidden_dim:]                       # conv_can(input_tensor)

    hcur = jnp.where(hcur >= 0.0, hcur, LEAKY_SLOPE * hcur)         # LeakyReLU
    update = jax.nn.sigmoid(gates)
    h_next = update * hcur + (1.0 - update) * jnp.tanh(cand)        # (H, Tp)

    # Zero the padded time region so the next conv's right halo sees true zero padding.
    lane = jax.lax.broadcasted_iota(jnp.int32, h_next.shape, 1)
    h_next = jnp.where(lane < t_valid, h_next, 0.0)

    # -- out_cur_conv (conv + folded BN) + LeakyReLU ----------------------------------
    y = conv3(h_next, wo_ref, bo_ref)                # (S, Tp)
    o_ref[0] = jnp.where(y >= 0.0, y, LEAKY_SLOPE * y)


# --------------------------------- wrapper ------------------------------------------
def gate_generate_forward(params, input_tensor, h_cur):
    x = jnp.asarray(input_tensor, jnp.float32)
    h = jnp.asarray(h_cur, jnp.float32)
    B, S, T = x.shape
    H, _, K = params["wh"].shape
    assert K == 3, "reference module hard-codes padding=1 for kernel_size=3"
    assert S % 8 == 0 and H % 8 == 0, "channel counts must be sublane aligned"

    tp = max(LANE, _round_up(T, LANE))
    # torch.cat([input_tensor, h_cur], dim=1) channel order, padded time -> lane-dense.
    comb = jnp.concatenate([x, h], axis=1)
    comb_p = jnp.pad(comb, ((0, 0), (0, 0), (0, tp - T)))

    # ---- exact 0/1 time-shift operators (host-built, bf16 MXU operands) -------------
    rows = jnp.arange(tp)[:, None]
    cols = jnp.arange(tp)[None, :]
    m_prev = (rows + 1 == cols).astype(jnp.bfloat16)     # v @ m_prev -> v[t-1], 0 at t=0
    m_next = (rows - 1 == cols).astype(jnp.bfloat16)     # v @ m_next -> v[t+1], 0 at t=Tp-1

    # ---- fold eval-mode BatchNorm into conv weight / bias ---------------------------
    def fold_bn(w, b, gamma, beta, mean, var):
        s = gamma / jnp.sqrt(var + BN_EPS)
        return w * s[:, None, None], s * (b - mean) + beta

    wh_f, bh_f = fold_bn(params["wh"], params["bh"],
                         params["h_bn_g"], params["h_bn_b"],
                         params["h_bn_mean"], params["h_bn_var"])
    wo_f, bo_f = fold_bn(params["wo"], params["bo"],
                         params["o_bn_g"], params["o_bn_b"],
                         params["o_bn_mean"], params["o_bn_var"])

    # ---- pack the three first-stage convs into one (3H, K*2S) weight ----------------
    # combined channel order is [input_tensor (0..S-1), h_cur (S..2S-1)]
    wh_emb = jnp.concatenate([jnp.zeros_like(wh_f), wh_f], axis=1)          # (H, 2S, K)
    wc_emb = jnp.concatenate([params["wc"], jnp.zeros_like(params["wc"])], axis=1)
    w3 = jnp.concatenate([params["wg"], wh_emb, wc_emb], axis=0)            # (3H, 2S, K)
    # taps are stacked [t-1 ; t ; t+1] along the contraction axis -> k-major packing
    w3_packed = jnp.transpose(w3, (0, 2, 1)).reshape(3 * H, K * 2 * S).astype(jnp.bfloat16)
    b3_packed = jnp.concatenate([params["bg"], bh_f, params["bc"]]).reshape(3 * H, 1)
    b3_packed = b3_packed.astype(jnp.float32)

    wo_packed = jnp.transpose(wo_f, (0, 2, 1)).reshape(S, K * H).astype(jnp.bfloat16)
    bo_packed = bo_f.reshape(S, 1).astype(jnp.float32)

    kernel = functools.partial(_gate_generate_kernel, hidden_dim=H, t_valid=T)
    out = pl.pallas_call(
        kernel,
        out_shape=jax.ShapeDtypeStruct((B, S, tp), jnp.float32),
        grid=(B,),
        in_specs=[
            pl.BlockSpec((1, 2 * S, tp), lambda b: (b, 0, 0)),
            pl.BlockSpec((tp, tp), lambda b: (0, 0)),
            pl.BlockSpec((tp, tp), lambda b: (0, 0)),
            pl.BlockSpec((3 * H, K * 2 * S), lambda b: (0, 0)),
            pl.BlockSpec((3 * H, 1), lambda b: (0, 0)),
            pl.BlockSpec((S, K * H), lambda b: (0, 0)),
            pl.BlockSpec((S, 1), lambda b: (0, 0)),
        ],
        out_specs=pl.BlockSpec((1, S, tp), lambda b: (b, 0, 0)),
        compiler_params=pltpu.CompilerParams(dimension_semantics=("parallel",)),
    )(comb_p, m_prev, m_next, w3_packed, b3_packed, wo_packed, bo_packed)
    return out[:, :, :T]


# --------------------------------- pure-JAX reference --------------------------------
def _reference_forward(params, x, h):
    def conv(v, w, b):
        y = jax.lax.conv_general_dilated(
            v, w, window_strides=(1,), padding=((1, 1),),
            dimension_numbers=("NCH", "OIH", "NCH"))
        return y + b[None, :, None]

    def bn(y, gamma, beta, mean, var):
        s = gamma / jnp.sqrt(var + BN_EPS)
        return y * s[None, :, None] + (beta - s * mean)[None, :, None]

    def leaky(y):
        return jnp.where(y >= 0, y, LEAKY_SLOPE * y)

    comb = jnp.concatenate([x, h], axis=1)
    gates = conv(comb, params["wg"], params["bg"])
    hcur = leaky(bn(conv(h, params["wh"], params["bh"]),
                    params["h_bn_g"], params["h_bn_b"],
                    params["h_bn_mean"], params["h_bn_var"]))
    update = jax.nn.sigmoid(gates)
    cand = jnp.tanh(conv(x, params["wc"], params["bc"]))
    h_next = update * hcur + (1.0 - update) * cand
    return leaky(bn(conv(h_next, params["wo"], params["bo"]),
                    params["o_bn_g"], params["o_bn_b"],
                    params["o_bn_mean"], params["o_bn_var"]))


# --------------------------------- deterministic init --------------------------------
def init_params(key, s_channel, hidden_dim, kernel_size, bias=True):
    keys = jax.random.split(key, 12)

    def w(k, shape, s=0.1):
        return (s * jax.random.normal(k, shape)).astype(jnp.float32)

    S, H, K = s_channel, hidden_dim, kernel_size
    zeros = lambda n: jnp.zeros((n,), jnp.float32)
    ones = lambda n: jnp.ones((n,), jnp.float32)
    return {
        "wg": w(keys[0], (H, 2 * S, K)),
        "bg": w(keys[1], (H,), 0.05) if bias else zeros(H),
        "wh": w(keys[2], (H, S, K)), "bh": w(keys[3], (H,), 0.05),
        "h_bn_g": 1.0 + w(keys[4], (H,), 0.1), "h_bn_b": w(keys[5], (H,), 0.05),
        "h_bn_mean": zeros(H), "h_bn_var": ones(H),
        "wc": w(keys[6], (H, S, K)),
        "bc": w(keys[7], (H,), 0.05) if bias else zeros(H),
        "wo": w(keys[8], (S, H, K)), "bo": w(keys[9], (S,), 0.05),
        "o_bn_g": 1.0 + w(keys[10], (S,), 0.1), "o_bn_b": w(keys[11], (S,), 0.05),
        "o_bn_mean": zeros(S), "o_bn_var": ones(S),
    }


# --------------------------------- main ----------------------------------------------
if __name__ == "__main__":
    BATCH, S_CHANNEL, T_CHANNEL, HIDDEN_DIM, KERNEL_SIZE = 2, 8, 68, 16, 3

    key = jax.random.PRNGKey(0)
    pkey, xkey, hkey = jax.random.split(key, 3)
    params = init_params(pkey, S_CHANNEL, HIDDEN_DIM, KERNEL_SIZE, bias=True)
    x = jax.random.normal(xkey, (BATCH, S_CHANNEL, T_CHANNEL), dtype=jnp.float32)
    h = jax.random.normal(hkey, (BATCH, S_CHANNEL, T_CHANNEL), dtype=jnp.float32)

    fwd = jax.jit(gate_generate_forward)
    out = jax.block_until_ready(fwd(params, x, h))
    assert out.shape == (BATCH, S_CHANNEL, T_CHANNEL), out.shape
    assert bool(jnp.all(jnp.isfinite(out)))

    ref = _reference_forward(params, x, h)
    max_err = float(jnp.max(jnp.abs(out - ref)))
    assert max_err < 1e-1, f"max abs error vs f32 reference: {max_err}"  # bf16 MXU tolerance
    print("KERNEL_OK")
</pallas_src>

<mosaic_0001>
module attributes {stable_mosaic.version = 11 : i64} {
  func.func @_gate_generate_kernel(%arg0: i32, %arg1: memref<1x16x128xf32, #tpu.memory_space<vmem>>, %arg2: memref<128x128xbf16, #tpu.memory_space<vmem>>, %arg3: memref<128x128xbf16, #tpu.memory_space<vmem>>, %arg4: memref<48x48xbf16, #tpu.memory_space<vmem>>, %arg5: memref<48x1xf32, #tpu.memory_space<vmem>>, %arg6: memref<8x48xbf16, #tpu.memory_space<vmem>>, %arg7: memref<8x1xf32, #tpu.memory_space<vmem>>, %arg8: memref<1x8x128xf32, #tpu.memory_space<vmem>>) attributes {dimension_semantics = [#tpu.dimension_semantics<parallel>], iteration_bounds = array<i64: 2>, scalar_prefetch = 0 : i64, scratch_operands = 0 : i64, tpu.core_type = #tpu.core_type<tc>, window_params = [{transform_indices = @transform_0, window_bounds = array<i64: 1, 16, 128>}, {pipeline_mode = #tpu.pipeline_mode<synchronous>, transform_indices = @transform_1, window_bounds = array<i64: 128, 128>}, {pipeline_mode = #tpu.pipeline_mode<synchronous>, transform_indices = @transform_2, window_bounds = array<i64: 128, 128>}, {pipeline_mode = #tpu.pipeline_mode<synchronous>, transform_indices = @transform_3, window_bounds = array<i64: 48, 48>}, {pipeline_mode = #tpu.pipeline_mode<synchronous>, transform_indices = @transform_4, window_bounds = array<i64: 48, 1>}, {pipeline_mode = #tpu.pipeline_mode<synchronous>, transform_indices = @transform_5, window_bounds = array<i64: 8, 48>}, {pipeline_mode = #tpu.pipeline_mode<synchronous>, transform_indices = @transform_6, window_bounds = array<i64: 8, 1>}, {transform_indices = @transform_7, window_bounds = array<i64: 1, 8, 128>}]} {
    %c0 = arith.constant 0 : index
    %c0_0 = arith.constant 0 : index
    %c0_1 = arith.constant 0 : index
    %0 = vector.load %arg1[%c0, %c0_0, %c0_1] : memref<1x16x128xf32, #tpu.memory_space<vmem>>, vector<1x16x128xf32>
    %1 = vector.shape_cast %0 : vector<1x16x128xf32> to vector<16x128xf32>
    %c0_2 = arith.constant 0 : index
    %c0_3 = arith.constant 0 : index
    %2 = vector.load %arg2[%c0_2, %c0_3] : memref<128x128xbf16, #tpu.memory_space<vmem>>, vector<128x128xbf16>
    %c0_4 = arith.constant 0 : index
    %c0_5 = arith.constant 0 : index
    %3 = vector.load %arg3[%c0_4, %c0_5] : memref<128x128xbf16, #tpu.memory_space<vmem>>, vector<128x128xbf16>
    %4 = arith.truncf %1 : vector<16x128xf32> to vector<16x128xbf16>
    %cst = arith.constant dense<0.000000e+00> : vector<16x128xf32>
    %5 = tpu.matmul %4, %2, %cst {dimension_numbers = #tpu.dot_dimension_numbers<[1], [0], [0], [1], [0, 0, 1, 1], [], []>} : vector<16x128xbf16>, vector<128x128xbf16>, vector<16x128xf32> -> vector<16x128xf32>
    %cst_6 = arith.constant dense<0.000000e+00> : vector<16x128xf32>
    %6 = tpu.matmul %4, %3, %cst_6 {dimension_numbers = #tpu.dot_dimension_numbers<[1], [0], [0], [1], [0, 0, 1, 1], [], []>} : vector<16x128xbf16>, vector<128x128xbf16>, vector<16x128xf32> -> vector<16x128xf32>
    %7 = arith.truncf %5 : vector<16x128xf32> to vector<16x128xbf16>
    %8 = arith.truncf %6 : vector<16x128xf32> to vector<16x128xbf16>
    %9 = tpu.concatenate %7, %4, %8 in 0 : vector<16x128xbf16>, vector<16x128xbf16>, vector<16x128xbf16> -> vector<48x128xbf16>
    %c0_7 = arith.constant 0 : index
    %c0_8 = arith.constant 0 : index
    %10 = vector.load %arg4[%c0_7, %c0_8] : memref<48x48xbf16, #tpu.memory_space<vmem>>, vector<48x48xbf16>
    %cst_9 = arith.constant dense<0.000000e+00> : vector<48x128xf32>
    %11 = tpu.matmul %10, %9, %cst_9 {dimension_numbers = #tpu.dot_dimension_numbers<[1], [0], [0], [1], [0, 0, 1, 1], [], []>} : vector<48x48xbf16>, vector<48x128xbf16>, vector<48x128xf32> -> vector<48x128xf32>
    %c0_10 = arith.constant 0 : index
    %c0_11 = arith.constant 0 : index
    %12 = vector.load %arg5[%c0_10, %c0_11] : memref<48x1xf32, #tpu.memory_space<vmem>>, vector<48x1xf32>
    %13 = vector.broadcast %12 : vector<48x1xf32> to vector<48x128xf32>
    %14 = arith.addf %11, %13 : vector<48x128xf32>
    %15 = vector.extract_strided_slice %14 {offsets = [0, 0], sizes = [16, 128], strides = [1, 1]} : vector<48x128xf32> to vector<16x128xf32>
    %16 = vector.extract_strided_slice %14 {offsets = [16, 0], sizes = [16, 128], strides = [1, 1]} : vector<48x128xf32> to vector<16x128xf32>
    %17 = vector.extract_strided_slice %14 {offsets = [32, 0], sizes = [16, 128], strides = [1, 1]} : vector<48x128xf32> to vector<16x128xf32>
    %cst_12 = arith.constant 0.000000e+00 : f32
    %18 = vector.broadcast %cst_12 : f32 to vector<16x128xf32>
    %19 = arith.cmpf oge, %16, %18 : vector<16x128xf32>
    %cst_13 = arith.constant 0.00999999977 : f32
    %20 = vector.broadcast %cst_13 : f32 to vector<16x128xf32>
    %21 = arith.mulf %20, %16 : vector<16x128xf32>
    %22 = arith.select %19, %16, %21 : vector<16x128xi1>, vector<16x128xf32>
    %23 = arith.negf %15 : vector<16x128xf32>
    %24 = math.exp %23 : vector<16x128xf32>
    %cst_14 = arith.constant 1.000000e+00 : f32
    %25 = vector.broadcast %cst_14 : f32 to vector<16x128xf32>
    %26 = arith.addf %25, %24 : vector<16x128xf32>
    %27 = arith.divf %25, %26 : vector<16x128xf32>
    %28 = arith.mulf %27, %22 : vector<16x128xf32>
    %cst_15 = arith.constant 1.000000e+00 : f32
    %29 = vector.broadcast %cst_15 : f32 to vector<16x128xf32>
    %30 = arith.subf %29, %27 : vector<16x128xf32>
    %31 = math.tanh %17 : vector<16x128xf32>
    %32 = arith.mulf %30, %31 : vector<16x128xf32>
    %33 = arith.addf %28, %32 : vector<16x128xf32>
    %34 = tpu.iota {dimensions = array<i32: 1>} : vector<16x128xi32>
    %c68_i32 = arith.constant 68 : i32
    %35 = vector.broadcast %c68_i32 : i32 to vector<16x128xi32>
    %36 = arith.cmpi slt, %34, %35 : vector<16x128xi32>
    %cst_16 = arith.constant 0.000000e+00 : f32
    %37 = vector.broadcast %cst_16 : f32 to vector<16x128xf32>
    %38 = arith.select %36, %33, %37 : vector<16x128xi1>, vector<16x128xf32>
    %39 = arith.truncf %38 : vector<16x128xf32> to vector<16x128xbf16>
    %cst_17 = arith.constant dense<0.000000e+00> : vector<16x128xf32>
    %40 = tpu.matmul %39, %2, %cst_17 {dimension_numbers = #tpu.dot_dimension_numbers<[1], [0], [0], [1], [0, 0, 1, 1], [], []>} : vector<16x128xbf16>, vector<128x128xbf16>, vector<16x128xf32> -> vector<16x128xf32>
    %cst_18 = arith.constant dense<0.000000e+00> : vector<16x128xf32>
    %41 = tpu.matmul %39, %3, %cst_18 {dimension_numbers = #tpu.dot_dimension_numbers<[1], [0], [0], [1], [0, 0, 1, 1], [], []>} : vector<16x128xbf16>, vector<128x128xbf16>, vector<16x128xf32> -> vector<16x128xf32>
    %42 = arith.truncf %40 : vector<16x128xf32> to vector<16x128xbf16>
    %43 = arith.truncf %41 : vector<16x128xf32> to vector<16x128xbf16>
    %44 = tpu.concatenate %42, %39, %43 in 0 : vector<16x128xbf16>, vector<16x128xbf16>, vector<16x128xbf16> -> vector<48x128xbf16>
    %c0_19 = arith.constant 0 : index
    %c0_20 = arith.constant 0 : index
    %45 = vector.load %arg6[%c0_19, %c0_20] : memref<8x48xbf16, #tpu.memory_space<vmem>>, vector<8x48xbf16>
    %cst_21 = arith.constant dense<0.000000e+00> : vector<8x128xf32>
    %46 = tpu.matmul %45, %44, %cst_21 {dimension_numbers = #tpu.dot_dimension_numbers<[1], [0], [0], [1], [0, 0, 1, 1], [], []>} : vector<8x48xbf16>, vector<48x128xbf16>, vector<8x128xf32> -> vector<8x128xf32>
    %c0_22 = arith.constant 0 : index
    %c0_23 = arith.constant 0 : index
    %47 = vector.load %arg7[%c0_22, %c0_23] : memref<8x1xf32, #tpu.memory_space<vmem>>, vector<8x1xf32>
    %48 = vector.broadcast %47 : vector<8x1xf32> to vector<8x128xf32>
    %49 = arith.addf %46, %48 : vector<8x128xf32>
    %cst_24 = arith.constant 0.000000e+00 : f32
    %50 = vector.broadcast %cst_24 : f32 to vector<8x128xf32>
    %51 = arith.cmpf oge, %49, %50 : vector<8x128xf32>
    %cst_25 = arith.constant 0.00999999977 : f32
    %52 = vector.broadcast %cst_25 : f32 to vector<8x128xf32>
    %53 = arith.mulf %52, %49 : vector<8x128xf32>
    %54 = arith.select %51, %49, %53 : vector<8x128xi1>, vector<8x128xf32>
    %c0_26 = arith.constant 0 : index
    %c0_27 = arith.constant 0 : index
    %c0_28 = arith.constant 0 : index
    %55 = vector.load %arg8[%c0_26, %c0_27, %c0_28] : memref<1x8x128xf32, #tpu.memory_space<vmem>>, vector<1x8x128xf32>
    %56 = vector.shape_cast %55 : vector<1x8x128xf32> to vector<8x128xf32>
    %57 = vector.shape_cast %54 : vector<8x128xf32> to vector<1x8x128xf32>
    tpu.vector_store %arg8[%c0_26, %c0_27, %c0_28], %57 {strides = array<i32>} : memref<1x8x128xf32, #tpu.memory_space<vmem>>, vector<1x8x128xf32>,
    return
  }
  func.func @transform_0(%arg0: i32) -> (i32, i32, i32) {
    %c0_i32 = arith.constant 0 : i32
    %c0_i32_0 = arith.constant 0 : i32
    %c0_i32_1 = arith.constant 0 : i32
    return %arg0, %c0_i32, %c0_i32_0 : i32, i32, i32
  }
  func.func @transform_1(%arg0: i32) -> (i32, i32) {
    %c0_i32 = arith.constant 0 : i32
    %c0_i32_0 = arith.constant 0 : i32
    %c0_i32_1 = arith.constant 0 : i32
    return %c0_i32, %c0_i32_0 : i32, i32
  }
  func.func @transform_2(%arg0: i32) -> (i32, i32) {
    %c0_i32 = arith.constant 0 : i32
    %c0_i32_0 = arith.constant 0 : i32
    %c0_i32_1 = arith.constant 0 : i32
    return %c0_i32, %c0_i32_0 : i32, i32
  }
  func.func @transform_3(%arg0: i32) -> (i32, i32) {
    %c0_i32 = arith.constant 0 : i32
    %c0_i32_0 = arith.constant 0 : i32
    %c0_i32_1 = arith.constant 0 : i32
    return %c0_i32, %c0_i32_0 : i32, i32
  }
  func.func @transform_4(%arg0: i32) -> (i32, i32) {
    %c0_i32 = arith.constant 0 : i32
    %c0_i32_0 = arith.constant 0 : i32
    %c0_i32_1 = arith.constant 0 : i32
    return %c0_i32, %c0_i32_0 : i32, i32
  }
  func.func @transform_5(%arg0: i32) -> (i32, i32) {
    %c0_i32 = arith.constant 0 : i32
    %c0_i32_0 = arith.constant 0 : i32
    %c0_i32_1 = arith.constant 0 : i32
    return %c0_i32, %c0_i32_0 : i32, i32
  }
  func.func @transform_6(%arg0: i32) -> (i32, i32) {
    %c0_i32 = arith.constant 0 : i32
    %c0_i32_0 = arith.constant 0 : i32
    %c0_i32_1 = arith.constant 0 : i32
    return %c0_i32, %c0_i32_0 : i32, i32
  }
  func.func @transform_7(%arg0: i32) -> (i32, i32, i32) {
    %c0_i32 = arith.constant 0 : i32
    %c0_i32_0 = arith.constant 0 : i32
    %c0_i32_1 = arith.constant 0 : i32
    return %arg0, %c0_i32, %c0_i32_0 : i32, i32, i32
  }
}

</mosaic_0001>

<bundles_post_ra>
// kernel: gate_generate_forward.1
= control target key start
LH: loop header
LB: loop body
LE: loop exit
PB: predicated region body
PF: predicated region fallthrough
CT: control target
= control target key end

     0   :  { %12 = vsyncpa [#allocation3], 0  ;;  %s1238_s0 = inlined_call_operand.vmem [shape: f32[2,16,128], index: 0, kind: input, shape index: {}]   ;;  %s1239_s1 = inlined_call_operand.vmem [shape: bf16[128,128], index: 1, kind: input, shape index: {}]   ;;  %s1240_s2 = inlined_call_operand.vmem [shape: bf16[128,128], index: 2, kind: input, shape index: {}]   ;;  %s1241_s3 = inlined_call_operand.vmem [shape: bf16[48,48], index: 3, kind: input, shape index: {}]   ;;  %s1242_s4 = inlined_call_operand.vmem [shape: f32[48,1], index: 4, kind: input, shape index: {}]   ;;  %s1243_s5 = inlined_call_operand.vmem [shape: bf16[8,48], index: 5, kind: input, shape index: {}]   ;;  %s1244_s6 = inlined_call_operand.vmem [shape: f32[8,1], index: 6, kind: input, shape index: {}]   ;;  %s1245_s7 = inlined_call_operand.hbm [shape: f32[2,8,128], index: 7, kind: output, shape index: {}]  }
   0x1   :  { %14 = vsyncpa [#allocation3 + $0x1], 0  ;;  %s1040_s24 = smov 0   ;;  %s1042_s25 = smov 0  }
   0x2   :  { %s1044_s26 = smov 0   ;;  %s1046_s27 = smov 0  }
   0x3 LB: > { %s1061_s28 = sadd.s32 4294967295, %s997_s27   ;;  %s764_s29 = sadd.s32 4294967294, %s997_s27   ;;  %s997_s27 = sphi %s1046_s27, %s1251_s27   ;;  %s993_s26 = sphi %s1044_s26, %s1250_s26   ;;  %s989_s25 = sphi %s1042_s25, %s1249_s25   ;;  %s985_s24 = sphi %s1040_s24, %s1248_s24  }
   0x4   : > { %s1065_s30 = sadd.s32 1, %s997_s27   ;;  %s179_s8 = sadd.s32 1, %s993_s26 }
   0x5   : > { %s176_s9 = ssub.s32 %s997_s27, %s1065_s30  ;;  %p189_p0 = scmp.ne.s32.totalorder %s993_s26, %s989_s25 }
   0x6   : > { %p177_p1 = scmp.eq.s32.totalorder %s176_s9, 0  ;;  %p190_p2 = scmp.eq.s32.totalorder %s1061_s28, 1 }
   0x7   : > { %p195_p3 = scmp.ne.s32.totalorder %s989_s25, %s985_s24  ;;  %p196_p4 = scmp.eq.s32.totalorder %s764_s29, 1 }
   0x8   : > { %s1076_s10 = scalar_select %p177_p1, %s993_s26, %s179_s8  }
   0x9   : > { %p1078_p5 = por %p190_p2, %p189_p0  ;;  %p1082_p6 = por %p196_p4, %p195_p3 }
   0xa   : > { %p767_p7 = scmp.ge.s32.totalorder %s997_s27, 1  ;;  %p240_p8 = scmp.lt.s32.totalorder %s997_s27, 3 }
   0xc   : > { %p241_p9 = pnand %p767_p7, %p240_p8 }
   0xd   : > { %p272_p10 = scmp.lt.s32.totalorder (!%p241_p9), %s1061_s28, 1  ;;  %s854_s18 = sshll.u32 (!%p241_p9), %s1061_s28, 3 }
   0xe   : > { %244 = sbr.rel (%p241_p9) target bundleno = 671 (0x29f), region = 48  ;;  %s700_s21 = scalar_lea.hbm (!%p241_p9), %s1245_s7, %s854_s18 }
   0xf   : > { %s704_s29 = sshll.u32 (!%p241_p9), %s700_s21, 4  ;;  %s955_s15 = scalar_lea.hbm (!%p241_p9), %s1245_s7, 16  ;;  %s705_s29 = int_to_ptr.hbm [resolvable:$true] %s704_s29 }
  0x13   : > { %v865_v0 = vld [vmem:[%s1239_s1 + $0x38] sm:$0xff]  ;;  %v864_v2 = vld [vmem:[%s1239_s1 + $0x30] sm:$0xff]  ;;  %v863_v4 = vld [vmem:[%s1239_s1 + $0x28] sm:$0xff]  ;;  %s273_s8 = scalar_select %p272_p10, %s1061_s28, 1  ;;  %v999_v24 = vmov 0   ;;  %vm517_vm0 = vcmask 392192  }
  0x14   : > { %v1094_v1 = vld [vmem:[%s1240_s2 + $0x38] sm:$0xff]  ;;  %368 = vmatpush.bf16.msra.mxu0 %v865_v0  ;;  %v1103_v3 = vld [vmem:[%s1240_s2 + $0x30] sm:$0xff]  ;;  %618 = vmatpush.bf16.msra.mxu3 %v865_v0  ;;  %v1113_v5 = vld [vmem:[%s1240_s2 + $0x28] sm:$0xff] }
  0x15   : > { %430 = vmatpush.bf16.msra.mxu1 %v1094_v1  ;;  %v862_v6 = vld [vmem:[%s1239_s1 + $0x20] sm:$0xff]  ;;  %s857_s16 = sshll.u32 %s273_s8, 4  ;;  %v861_v8 = vld [vmem:[%s1239_s1 + $0x18] sm:$0xff]  ;;  %v860_v10 = vld [vmem:[%s1239_s1 + $0x10] sm:$0xff]  ;;  %920 = vset.pattern.permute.xlu0 %v999_v24  ;;  %s949_s8 = sshra.s32 %s705_s29, 4  ;;  %s950_s8 = int_to_ptr.hbm [resolvable:$true] %s949_s8 }
  0x16   : > { %v1123_v7 = vld [vmem:[%s1240_s2 + $0x20] sm:$0xff]  ;;  %v1132_v9 = vld [vmem:[%s1240_s2 + $0x18] sm:$0xff]  ;;  %s276_s23 = scalar_lea.vmem %s1238_s0, %s857_s16  ;;  %v1144_v11 = vld [vmem:[%s1240_s2 + $0x10] sm:$0xff]  ;;  %921 = vset.pattern.permute.xlu1 %v999_v24  ;;  %922 = vset.pattern.permute.xlu2 %v999_v24  ;;  %s269_s16 = sand.u32 1, %s989_s25  }
  0x17   : > { %v278_v12 = vld [vmem:[%s276_s23] sm:$0xff]  ;;  %v279_v13 = vld [vmem:[%s276_s23 + $0x8] sm:$0xff]  ;;  %v468_v34 = vld [vmem:[%s1242_s4 + $0x10] sm:$0xff]  ;;  %s768_s17 = sshll.u32 %s269_s16, 3  ;;  %s690_s9 = scalar_lea.sflag [#allocation3], %s269_s16 }
  0x18   : > { %369 = vmatpush.bf16.msra.mxu0 %v864_v2  ;;  %619 = vmatpush.bf16.msra.mxu3 %v864_v2  ;;  %v312_v14 = vpack.c.bf16 %v278_v12, %v278_v12  ;;  %v313_v15 = vpack.c.bf16 %v279_v13, %v279_v13  ;;  %v859_v16 = vld [vmem:[%s1239_s1 + $0x8] sm:$0xff]  ;;  %v858_v20 = vld [vmem:[%s1239_s1] sm:$0xff]  ;;  %v469_v43 = vld [vmem:[%s1242_s4 + $0x18] sm:$0xff]  ;;  %s271_s22 = scalar_lea.vmem [#allocation2], %s768_s17  ;;  %s951_s28 = scalar_lea.hbm %s950_s8, 8 }
  0x19   : > { %431 = vmatpush.bf16.msra.mxu1 %v1103_v3  ;;  %v1153_v17 = vld [vmem:[%s1240_s2 + $0x8] sm:$0xff]  ;;  %v866_v21 = vld [vmem:[%s1240_s2] sm:$0xff]  ;;  %484 = vperm.xlu2 %922, %v468_v34   ;;  %v876_v47 = vld [vmem:[%s1241_s3 + $0x10] sm:$0xff]  ;;  %s702_s23 = sshll.u32 %s271_s22, 4  ;;  %p952_p11 = scmp.ne.s32.totalorder %s950_s8, %s951_s28  ;;  %s703_s23 = int_to_ptr.vmem [resolvable:$true] %s702_s23 }
  0x1a   : > { %v316_v18 = vunpack.c.l.b16 %v312_v14  ;;  %v317_v19 = vunpack.c.l.b16 %v313_v15  ;;  %v466_v23 = vld [vmem:[%s1242_s4] sm:$0xff]  ;;  %v467_v25 = vld [vmem:[%s1242_s4 + $0x8] sm:$0xff]  ;;  %p956_p0 = scmp.lt.s32.totalorder %s950_s8, %s1245_s7  ;;  %p957_p1 = scmp.lt.s32.totalorder %s955_s15, %s951_s28 }
  0x1b   : > { %474 = vperm.xlu0 %920, %v466_v23   ;;  %v663_v28 = vld [vmem:[%s1244_s6] sm:$0xff]  ;;  %v471_v42 = vld [vmem:[%s1242_s4 + $0x28] sm:$0xff]  ;;  %p953_p12 = pnand %p952_p11, %p1078_p5 }
  0x1c   : > { %370 = vmatpush.bf16.msra.mxu0 %v863_v4  ;;  %620 = vmatpush.bf16.msra.mxu3 %v863_v4  ;;  %v318_v22 = vpack.c.b16 %v317_v19, %v316_v18  ;;  %v470_v33 = vld [vmem:[%s1242_s4 + $0x20] sm:$0xff]  ;;  %v875_v46 = vld [vmem:[%s1241_s3 + $0x8] sm:$0xff]  ;;  %v605_v19 = vlaneseq  ;;  %p958_p2 = por %p957_p1, %p956_p0 }
  0x1d   : > { %432 = vmatpush.bf16.msra.mxu1 %v1113_v5  ;;  %494 = vperm.xlu1 %921, %v470_v33   ;;  %v874_v45 = vld [vmem:[%s1241_s3] sm:$0xff]  ;;  %p954_p13 = pneg %p953_p12 }
  0x1f   : > { %p959_p3 = pnand %p958_p2, %p954_p13 }
  0x20   : > { %371 = vmatpush.bf16.msra.mxu0 %v862_v6  ;;  %621 = vmatpush.bf16.msra.mxu3 %v862_v6 }
  0x21   : > { %433 = vmatpush.bf16.msra.mxu1 %v1123_v7  ;;  %489 = vperm.xlu2 %922, %v469_v43  }
  0x23   : > { %479 = vperm.xlu0 %920, %v467_v25  }
  0x24   : > { %372 = vmatpush.bf16.msra.mxu0 %v861_v8  ;;  %622 = vmatpush.bf16.msra.mxu3 %v861_v8 }
  0x25   : > { %434 = vmatpush.bf16.msra.mxu1 %v1132_v9  ;;  %499 = vperm.xlu1 %921, %v471_v42  }
  0x28   : > { %373 = vmatpush.bf16.msra.mxu0 %v860_v10  ;;  %623 = vmatpush.bf16.msra.mxu3 %v860_v10 }
  0x29   : > { %435 = vmatpush.bf16.msra.mxu1 %v1144_v11 }
  0x2b   : > { %666 = vperm.xlu0 %920, %v663_v28  }
  0x2c   : > { %374 = vmatpush.bf16.msra.mxu0 %v859_v16  ;;  %624 = vmatpush.bf16.msra.mxu3 %v859_v16 }
  0x2d   : > { %436 = vmatpush.bf16.msra.mxu1 %v1153_v17 }
  0x30   : > { %375 = vmatpush.bf16.msra.mxu0 %v858_v20  ;;  %625 = vmatpush.bf16.msra.mxu3 %v858_v20 }
  0x31   : > { %437 = vmatpush.bf16.msra.mxu1 %v866_v21 }
  0x33   : > { %376 = vmatmul.bf16.vlgmr.msra.gmra.mxu0 %v318_v22 }
  0x34   : > { %438 = vmatmul.bf16.vlgmr.msra.gmra.mxu1 %v318_v22 }
  0x73   : > { %v485_v61 = vpop.permute.xlu2 %484 }
  0x7b   : > { %v490_v14 = vpop.permute.xlu2 %489 }
  0x8d   : > { %v475_v48 = vpop.permute.xlu0 %474 }
  0x8f   : > { %v495_v0 = vpop.permute.xlu1 %494 }
  0x95   : > { %v480_v53 = vpop.permute.xlu0 %479 }
  0xb0   : > { %v377_v26 = vpop.f32.mrf.mxu0 }
  0xb1   : > { %v439_v27 = vpop.f32.mrf.mxu1  ;;  %v444_v37 = vpack.c.bf16 %v377_v26, %v377_v26 }
  0xb2   : > { %v446_v29 = vpack.c.bf16 %v439_v27, %v439_v27 }
  0xb3   : > { %v450_v40 = vunpack.c.l.b16 %v444_v37 }
  0xb4   : > { %v456_v35 = vunpack.c.l.b16 %v446_v29 }
  0xb8   : > { %v379_v32 = vpop.f32.mrf.mxu0 }
  0xb9   : > { %v441_v30 = vpop.f32.mrf.mxu1  ;;  %v445_v38 = vpack.c.bf16 %v379_v32, %v379_v32 }
  0xba   : > { %v447_v31 = vpack.c.bf16 %v441_v30, %v441_v30  ;;  %v606_v30 = vand.u32 127, %v605_v19 }
  0xbb   : > { %v451_v41 = vunpack.c.l.b16 %v445_v38 }
  0xbc   : > { %v457_v36 = vunpack.c.l.b16 %v447_v31  ;;  %vm607_vm11 = vcmp.lt.s32.totalorder %v606_v30, 68 }
  0xbd   : > { %v452_v44 = vpack.c.b16 %v451_v41, %v450_v40 }
  0xbe   : > { %v458_v39 = vpack.c.b16 %v457_v36, %v456_v35 }
  0xc0   : > { %532 = vmatpush.bf16.msrb.mxu1 %v458_v39  ;;  %877 = vmatpush.bf16.msra.mxu2 %v458_v39 }
  0xc4   : > { %533 = vmatpush.bf16.msrb.mxu1 %v318_v22  ;;  %878 = vmatpush.bf16.msra.mxu2 %v318_v22 }
  0xc8   : > { %534 = vmatpush.bf16.msrb.mxu1 %v452_v44  ;;  %879 = vmatpush.bf16.msra.mxu2 %v452_v44 }
  0xcb   : > { %847 = vmatmul.msk.bf16.vlgmr.msrb.gmra.mxu1 %vm517_vm0, %v874_v45  ;;  %848 = vmatmul.msk.bf16.vlgmr.msra.gmra.mxu2 %vm517_vm0, %v875_v46 }
  0xcc   : > { %632 = vmatpush.bf16.msrb.mxu2 %v1094_v1 }
  0xd0   : > { %633 = vmatpush.bf16.msrb.mxu2 %v1103_v3 }
  0xd4   : > { %634 = vmatpush.bf16.msrb.mxu2 %v1113_v5 }
  0xd8   : > { %635 = vmatpush.bf16.msrb.mxu2 %v1123_v7 }
  0xdb   : > { %849 = vmatmul.msk.bf16.gmra.mxu2 %vm517_vm0, %v876_v47 }
  0xdc   : > { %636 = vmatpush.bf16.msrb.mxu2 %v1132_v9 }
  0xe0   : > { %637 = vmatpush.bf16.msrb.mxu2 %v1144_v11 }
  0xe4   : > { %638 = vmatpush.bf16.msrb.mxu2 %v1153_v17  ;;  %v500_v17 = vpop.permute.xlu1 %499 }
  0xe8   : > { %639 = vmatpush.bf16.msrb.mxu2 %v866_v21 }
 0x148   : > { %v536_v49 = vpop.f32.mrf.mxu1 }
 0x149   : > { %v537_v50 = vadd.f32 %v536_v49, %v475_v48 }
 0x14b   : > { %v850_v51 = vmul.f32 -1.442695, %v537_v50 }
 0x14d   : > { %923 = vpow2.f32 %v850_v51 }
 0x14e   : > { %v541_v52 = vpop.f32.mrf.mxu2 }
 0x14f   : > { %v542_v8 = vadd.f32 %v541_v52, %v485_v61 }
 0x150   : > { %v538_v54 = vpop.f32.mrf.mxu1 }
 0x151   : > { %v539_v55 = vadd.f32 %v538_v54, %v480_v53  ;;  %v553_v15 = vmul.f32 0.01, %v542_v8  ;;  %vm551_vm5 = vcmp.ge.f32.partialorder %v542_v8, 0.0 }
 0x153   : > { %v924_v56 = vpop.eup %923  ;;  %v851_v57 = vmul.f32 -1.442695, %v539_v55  ;;  %v555_v29 = vsel %vm551_vm5, %v542_v8, %v553_v15 }
 0x154   : > { %v563_v58 = vadd.f32 1.0, %v924_v56 }
 0x155   : > { %925 = vpow2.f32 %v851_v57 }
 0x156   : > { %927 = vrcp.f32 %v563_v58  ;;  %v543_v59 = vpop.f32.mrf.mxu2  ;;  %v576_v5 = vand.u32 2147483648, %v563_v58  ;;  %v574_v7 = vand.u32 2147483647, %v563_v58  ;;  %vm570_vm2 = vweird.f32 %v563_v58 }
 0x157   : > { %v544_v24 = vadd.f32 %v543_v59, %v490_v14 }
 0x158   : > { %v577_v11 = vor.u32 1.1754944e-38, %v576_v5  ;;  %vm575_vm4 = vcmp.eq.f32.partialorder %v574_v7, 8.507059e+37 }
 0x159   : > { %v554_v33 = vmul.f32 0.01, %v544_v24  ;;  %vm552_vm9 = vcmp.ge.f32.partialorder %v544_v24, 0.0 }
 0x15b   : > { %v926_v60 = vpop.eup %925  ;;  %v556_v40 = vsel %vm552_vm9, %v544_v24, %v554_v33 }
 0x15c   : > { %v928_v62 = vpop.eup %927  ;;  %v564_v63 = vadd.f32 1.0, %v926_v60 }
 0x15d   : > { %v566_v1 = vmul.f32 %v928_v62, %v563_v58  ;;  %vm571_vm1 = vweird.f32 %v928_v62 }
 0x15e   : > { %929 = vrcp.f32 %v564_v63  ;;  %v546_v2 = vpop.f32.mrf.mxu2  ;;  %vm572_vm3 = vmor %vm570_vm2, %vm571_vm1  ;;  %v589_v25 = vand.u32 2147483647, %v564_v63  ;;  %v591_v26 = vand.u32 2147483648, %v564_v63  ;;  %vm585_vm7 = vweird.f32 %v564_v63 }
 0x15f   : > { %v567_v3 = vsub.f32 1.0, %v566_v1  ;;  %v547_v4 = vadd.f32 %v546_v2, %v495_v0  ;;  %v662_v1 = vld [vmem:[%s1243_s5] sm:$0xf]  ;;  %v667_v2 = vpop.permute.xlu0 %666 }
 0x160   : > { %v592_v34 = vor.u32 1.1754944e-38, %v591_v26  ;;  %vm590_vm10 = vcmp.eq.f32.partialorder %v589_v25, 8.507059e+37 }
 0x161   : > { %v568_v6 = vmul.f32 %v928_v62, %v567_v3  ;;  %931 = vtanh.f32 %v547_v4 }
 0x163   : > { %v569_v9 = vadd.f32 %v928_v62, %v568_v6 }
 0x164   : > { %v930_v10 = vpop.eup %929 }
 0x165   : > { %v573_v12 = vsel %vm572_vm3, %v928_v62, %v569_v9  ;;  %v581_v13 = vmul.f32 %v930_v10, %v564_v63  ;;  %vm586_vm6 = vweird.f32 %v930_v10 }
 0x166   : > { %v578_v16 = vsel %vm575_vm4, %v577_v11, %v573_v12  ;;  %v548_v18 = vpop.f32.mrf.mxu2  ;;  %vm587_vm8 = vmor %vm585_vm7, %vm586_vm6 }
 0x167   : > { %v932_v20 = vpop.eup %931  ;;  %v597_v21 = vsub.f32 1.0, %v578_v16  ;;  %v582_v22 = vsub.f32 1.0, %v581_v13  ;;  %v549_v23 = vadd.f32 %v548_v18, %v500_v17  ;;  %v595_v31 = vmul.f32 %v578_v16, %v555_v29 }
 0x169   : > { %v583_v27 = vmul.f32 %v930_v10, %v582_v22  ;;  %v601_v28 = vmul.f32 %v932_v20, %v597_v21  ;;  %933 = vtanh.f32 %v549_v23 }
 0x16b   : > { %v584_v32 = vadd.f32 %v930_v10, %v583_v27  ;;  %v603_v36 = vadd.f32 %v601_v28, %v595_v31 }
 0x16d   : > { %v588_v35 = vsel %vm587_vm8, %v930_v10, %v584_v32  ;;  %v608_v43 = vsel %vm607_vm11, %v603_v36, 0.0 }
 0x16e   : > { %v593_v37 = vsel %vm590_vm10, %v592_v34, %v588_v35  ;;  %v610_v45 = vpack.c.bf16 %v608_v43, %v608_v43 }
 0x16f   : > { %v934_v38 = vpop.eup %933  ;;  %v598_v39 = vsub.f32 1.0, %v593_v37  ;;  %v596_v41 = vmul.f32 %v593_v37, %v556_v40 }
 0x170   : > { %v614_v48 = vunpack.c.l.b16 %v610_v45 }
 0x171   : > { %v602_v42 = vmul.f32 %v934_v38, %v598_v39 }
 0x173   : > { %v604_v44 = vadd.f32 %v602_v42, %v596_v41 }
 0x175   : > { %v609_v46 = vsel %vm607_vm11, %v604_v44, 0.0 }
 0x176   : > { %v611_v47 = vpack.c.bf16 %v609_v46, %v609_v46 }
 0x178   : > { %v615_v49 = vunpack.c.l.b16 %v611_v47 }
 0x17a   : > { %v616_v50 = vpack.c.b16 %v615_v49, %v614_v48 }
 0x17c   : > { %626 = vmatmul.bf16.vlgmr.msra.gmra.mxu3 %v616_v50  ;;  %640 = vmatmul.bf16.vlgmr.msrb.gmra.mxu2 %v616_v50 }
 0x1ff   : > { %v627_v51 = vpop.f32.mrf.mxu3  ;;  %v641_v52 = vpop.f32.mrf.mxu2 }
 0x200   : > { %v648_v53 = vpack.c.bf16 %v641_v52, %v641_v52  ;;  %v646_v61 = vpack.c.bf16 %v627_v51, %v627_v51 }
 0x202   : > { %v658_v57 = vunpack.c.l.b16 %v648_v53  ;;  %v652_v63 = vunpack.c.l.b16 %v646_v61 }
 0x207   : > { %v643_v54 = vpop.f32.mrf.mxu2  ;;  %v629_v56 = vpop.f32.mrf.mxu3 }
 0x208   : > { %v649_v55 = vpack.c.bf16 %v643_v54, %v643_v54  ;;  %v647_v59 = vpack.c.bf16 %v629_v56, %v629_v56 }
 0x20a   : > { %v659_v58 = vunpack.c.l.b16 %v649_v55  ;;  %v653_v62 = vunpack.c.l.b16 %v647_v59 }
 0x20c   : > { %v660_v60 = vpack.c.b16 %v659_v58, %v658_v57  ;;  %v654_v0 = vpack.c.b16 %v653_v62, %v652_v63 }
 0x20e   : > { %677 = vmatpush.bf16.msrb.mxu0 %v660_v60 }
 0x212   : > { %678 = vmatpush.bf16.msrb.mxu0 %v616_v50 }
 0x216   : > { %679 = vmatpush.bf16.msrb.mxu0 %v654_v0 }
 0x219   : > { %852 = vmatmul.msk.bf16.vlgmr.msrb.gmra.mxu0 %vm517_vm0, %v662_v1 }
 0x296   : > { %v681_v3 = vpop.f32.mrf.mxu0 }
 0x297   : > { %v682_v4 = vadd.f32 %v681_v3, %v667_v2 }
 0x299   : > { %vm685_vm12 = vcmp.ge.f32.partialorder %v682_v4, 0.0  ;;  %v686_v5 = vmul.f32 0.01, %v682_v4 }
 0x29b   : > { %v687_v6 = vsel %vm685_vm12, %v682_v4, %v686_v5 }
 0x29c   : > { %688 = vst [vmem:[%s271_s22] sm:$0xff] %v687_v6 }
 0x29d   : > { %962 = shalt.err (!%p959_p3)
}
 0x29e   : > { %880 = dma.vmem_to_hbm [thread:$0]  (%p1078_p5), %s703_s23, 128, %s705_s29, %s690_s9   ;;  %v683_v7 = vpop.f32.mrf.mxu0 }
 0x29f PF: > { %p886_p4 = scmp.ge.s32.totalorder %s997_s27, 2  ;;  %s716_s16 = sand.u32 1, %s985_s24  }
 0x2a0   : > { %s717_s19 = scalar_lea.sflag [#allocation3], %s716_s16 }
 0x2a1   : > { %p883_p7 = pnand %p886_p4, %p1082_p6 }
 0x2a3   : > { %p884_p8 = pneg %p883_p7 }
 0x2a5   : > { %980 = dma.done.wait (%p884_p8), %s717_s19, 128  }
 0x2a6   : > { %982 = vsyncadd (%p884_p8), %s717_s19, 4294967168  ;;  %p17_p9 = scmp.ge.s32.totalorder %s1065_s30, 4   ;;  %s1248_s24 = smov %s989_s25 }
 0x2a7   : > { %s1249_s25 = smov %s993_s26  ;;  %s1250_s26 = smov %s1076_s10 }
 0x2a8   : > { %s1251_s27 = smov %s1065_s30  ;;  %19 = sbr.rel (!%p17_p9) target bundleno = 3 (0x3), region = 83 }
 0x2ad   :  { %723 = vsyncpa [#allocation3], 1 }
 0x2ae   :  { %725 = vsyncpa [#allocation3 + $0x1], 1 }

</bundles_post_ra>
